<compile_context>
chip_gen: v5e
topology: v5e:2x2
jax: 0.10.0
libtpu: 0.0.40
codegen_flags: <defaults>
</compile_context>

<pallas_src>
import functools

import jax
import jax.numpy as jnp
from jax.experimental import pallas as pl
from jax.experimental.pallas import tpu as pltpu


def _round_up(a, b):
    return ((a + b - 1) // b) * b


def _dice_kernel(x_ref, y_ref, inter_out, pden_out, mden_out,
                 inter_acc, pden_acc, mden_acc,
                 *, ignore_label, p, hw, ts, chunk, n_tiles, needs_pad_mask):
    """Grid: (spatial half [parallel], spatial tile [arbitrary/reduction])."""
    t = pl.program_id(1)

    @pl.when(t == 0)
    def _init():
        inter_acc[...] = jnp.zeros_like(inter_acc)
        pden_acc[...] = jnp.zeros_like(pden_acc)
        mden_acc[...] = jnp.zeros_like(mden_acc)

    B, C, _ = x_ref.shape
    n_sub = ts // chunk

    # Global lane offset of this tile (used to mask out wrapper padding).
    base = (pl.program_id(0) * n_tiles + t) * ts

    c_iota = jax.lax.broadcasted_iota(jnp.int32, (1, C, chunk), 1)
    if needs_pad_mask:
        lane_iota = jax.lax.broadcasted_iota(jnp.int32, (1, 1, chunk), 2)

    inter_t = jnp.zeros((B, C, chunk), jnp.float32)
    pden_t = jnp.zeros((B, C, chunk), jnp.float32)
    mden_t = jnp.zeros((B, C, chunk), jnp.float32)

    # Process the tile in lane chunks: per-step reductions stay per-lane (VPU
    # adds only); the lone cross-lane (XLU) reduce happens once, in finalize.
    for k in range(n_sub):
        sl = slice(k * chunk, (k + 1) * chunk)
        xk = x_ref[:, :, sl].astype(jnp.float32)   # (B, C, chunk)
        lk = y_ref[:, :, sl]                       # (B, 1, chunk) int32

        # Per-pixel softmax over the channel (sublane) axis. Division is done
        # via the EUP approximate reciprocal + one Newton step (f32-accurate).
        xmax = jnp.max(xk, axis=1, keepdims=True)
        ex = jnp.exp(xk - xmax)
        denom = jnp.sum(ex, axis=1, keepdims=True)
        r = pl.reciprocal(denom, approx=True)
        r = r * (2.0 - denom * r)
        probs = ex * r

        onehot = (lk == c_iota).astype(jnp.float32)   # (B, C, chunk)

        valid = None
        if ignore_label >= 0:
            valid = lk != ignore_label
        if needs_pad_mask:
            pad_ok = (base + k * chunk + lane_iota) < hw
            valid = pad_ok if valid is None else jnp.logical_and(valid, pad_ok)
        if valid is not None:
            vmask = valid.astype(jnp.float32)
            onehot = onehot * vmask
            probs = probs * vmask

        if p == 1:
            probs_p = probs
        elif p == 2:
            probs_p = probs * probs
        else:
            probs_p = jnp.power(probs, float(p))

        inter_t = inter_t + probs * onehot
        pden_t = pden_t + probs_p
        mden_t = mden_t + onehot

    inter_acc[...] += inter_t
    pden_acc[...] += pden_t
    mden_acc[...] += mden_t

    @pl.when(t == pl.num_programs(1) - 1)
    def _finalize():
        inter_out[...] = jnp.sum(inter_acc[...], axis=2)[None]
        pden_out[...] = jnp.sum(pden_acc[...], axis=2)[None]
        mden_out[...] = jnp.sum(mden_acc[...], axis=2)[None]


def dice_loss(x, y, weight=None, ignore_channel=-1, ignore_label=-1,
              smooth=0.0, p=1, reduction='mean'):
    if reduction not in {'none', 'mean', 'sum', 'batch'}:
        raise RuntimeError(f"Unsupported reduction '{reduction}'.")

    B, C, H, W = x.shape
    HW = H * W

    # Keep x in its native dtype (bf16 stays bf16 -> halves the dominant HBM
    # stream); the kernel casts to f32 after load, before exp.
    if x.dtype not in (jnp.float32, jnp.bfloat16):
        x = x.astype(jnp.float32)
    xf = x.reshape(B, C, HW)
    yf = y.reshape(B, 1, HW).astype(jnp.int32)

    # ---- tiling -------------------------------------------------------------
    LANE = 128
    itemsize = jnp.dtype(x.dtype).itemsize
    # Double-buffered x + y DMA bytes per lane of tile; keep them inside a
    # ~16 MiB budget (chunk intermediates / scratch are bounded separately).
    bytes_per_lane = 2 * B * C * itemsize + 2 * B * 4
    ts_cap = (16 * 1024 * 1024) // bytes_per_lane
    ts_cap = max(LANE, min(8192, (ts_cap // LANE) * LANE))

    # Leading "parallel" grid axis: split the spatial axis in two so v7x's
    # second TensorCore gets half the work (harmless on single-TC chips).
    nsplit = 2 if HW >= 2 * LANE else 1
    lanes_per_split = _round_up(pl.cdiv(HW, nsplit), LANE)

    if lanes_per_split <= ts_cap:
        n_tiles = 1
        ts = lanes_per_split
    else:
        n_tiles = pl.cdiv(lanes_per_split, ts_cap)
        ts = _round_up(pl.cdiv(lanes_per_split, n_tiles), LANE)

    # In-kernel processing chunk (bounds elementwise intermediate VMEM).
    if ts % 512 == 0:
        chunk = 512
    elif ts % 256 == 0:
        chunk = 256
    else:
        chunk = 128

    hw_pad = nsplit * n_tiles * ts
    needs_pad_mask = hw_pad != HW
    if needs_pad_mask:
        pad = hw_pad - HW
        xf = jnp.pad(xf, ((0, 0), (0, 0), (0, pad)))
        yf = jnp.pad(yf, ((0, 0), (0, 0), (0, pad)))

    kernel = functools.partial(
        _dice_kernel,
        ignore_label=int(ignore_label), p=int(p), hw=HW, ts=ts, chunk=chunk,
        n_tiles=n_tiles, needs_pad_mask=needs_pad_mask)

    def xy_index_map(s, t):
        return (0, 0, s * n_tiles + t)

    def out_index_map(s, t):
        return (s, 0, 0)

    out_sds = jax.ShapeDtypeStruct((nsplit, B, C), jnp.float32)
    inter_p, pden_p, mden_p = pl.pallas_call(
        kernel,
        out_shape=(out_sds, out_sds, out_sds),
        grid_spec=pltpu.PrefetchScalarGridSpec(
            num_scalar_prefetch=0,
            grid=(nsplit, n_tiles),
            in_specs=[
                pl.BlockSpec((B, C, ts), xy_index_map),
                pl.BlockSpec((B, 1, ts), xy_index_map),
            ],
            out_specs=[
                pl.BlockSpec((1, B, C), out_index_map),
                pl.BlockSpec((1, B, C), out_index_map),
                pl.BlockSpec((1, B, C), out_index_map),
            ],
            scratch_shapes=[pltpu.VMEM((B, C, chunk), jnp.float32)] * 3,
        ),
        compiler_params=pltpu.CompilerParams(
            dimension_semantics=("parallel", "arbitrary"),
            vmem_limit_bytes=32 * 1024 * 1024),
    )(xf, yf)

    # ---- tiny (B, C) epilogue in plain JAX ----------------------------------
    inter = jnp.sum(inter_p, axis=0)
    pden = jnp.sum(pden_p, axis=0)
    mden = jnp.sum(mden_p, axis=0)

    if weight is None:
        w = jnp.ones((C,), jnp.float32)
    else:
        w = jnp.asarray(weight, jnp.float32).reshape(C)
    if 0 <= ignore_channel < C:
        w = w.at[ignore_channel].set(0.0)

    # NOTE: with smooth == 0 and a fully-ignored (b, c) this yields 0/0
    # (same behaviour as the previous kernel; precondition: smooth > 0 there).
    dice = (2.0 * inter + smooth) / (pden + mden + smooth)
    per_bc = (1.0 - dice) * w[None, :]

    n_valid_c = C - (1 if 0 <= ignore_channel < C else 0)
    if reduction == 'none':
        return per_bc
    if reduction == 'sum':
        return jnp.sum(per_bc)
    if reduction == 'mean':
        return jnp.sum(per_bc) / (B * n_valid_c)
    # 'batch': mean over channels per batch element -> shape (B,)
    return jnp.sum(per_bc, axis=1) / n_valid_c


def _dice_ref(x, y, smooth=0.0, p=1):
    """Pure-JAX per-(batch, channel) soft-Dice reference (no ignore/weight)."""
    probs = jax.nn.softmax(x, axis=1)
    onehot = jax.nn.one_hot(y, x.shape[1], axis=1, dtype=jnp.float32)
    inter = jnp.sum(probs * onehot, axis=(2, 3))
    den = jnp.sum(probs ** p, axis=(2, 3)) + jnp.sum(onehot, axis=(2, 3))
    return 1.0 - (2.0 * inter + smooth) / (den + smooth)   # (B, C)


if __name__ == "__main__":
    key = jax.random.PRNGKey(0)
    kx, ky, kx2, ky2 = jax.random.split(key, 4)

    # Default module config: weight=None, ignore_channel=-1, ignore_label=-1,
    # smooth=0, p=1, reduction='mean'.
    B, C, H, W = 2, 4, 16, 16
    x = jax.random.normal(kx, (B, C, H, W), jnp.float32)    # logits, NCHW
    y = jax.random.randint(ky, (B, H, W), 0, C, jnp.int32)  # integer labels
    loss = jax.block_until_ready(dice_loss(x, y))
    ref = jnp.mean(_dice_ref(x, y))
    assert jnp.allclose(loss, ref, rtol=1e-4, atol=1e-5), (loss, ref)

    # Shape whose H*W is not a multiple of 128 (exercises the pad+mask path).
    B2, C2, H2, W2 = 2, 3, 10, 10
    x2 = jax.random.normal(kx2, (B2, C2, H2, W2), jnp.float32)
    y2 = jax.random.randint(ky2, (B2, H2, W2), 0, C2, jnp.int32)
    loss2 = jax.block_until_ready(dice_loss(x2, y2, reduction='sum'))
    ref2 = jnp.sum(_dice_ref(x2, y2))
    assert jnp.allclose(loss2, ref2, rtol=1e-4, atol=1e-5), (loss2, ref2)

    print("KERNEL_OK")
</pallas_src>

<mosaic_0001>
module attributes {stable_mosaic.version = 11 : i64} {
  func.func @_dice_kernel(%arg0: i32, %arg1: i32, %arg2: memref<2x4x128xf32, #tpu.memory_space<vmem>>, %arg3: memref<2x1x128xi32, #tpu.memory_space<vmem>>, %arg4: memref<1x2x4xf32, #tpu.memory_space<vmem>>, %arg5: memref<1x2x4xf32, #tpu.memory_space<vmem>>, %arg6: memref<1x2x4xf32, #tpu.memory_space<vmem>>, %arg7: memref<2x4x128xf32, #tpu.memory_space<vmem>>, %arg8: memref<2x4x128xf32, #tpu.memory_space<vmem>>, %arg9: memref<2x4x128xf32, #tpu.memory_space<vmem>>) attributes {dimension_semantics = [#tpu.dimension_semantics<parallel>, #tpu.dimension_semantics<arbitrary>], iteration_bounds = array<i64: 2, 1>, scalar_prefetch = 0 : i64, scratch_operands = 3 : i64, tpu.core_type = #tpu.core_type<tc>, window_params = [{transform_indices = @transform_0, window_bounds = array<i64: 2, 4, 128>}, {transform_indices = @transform_1, window_bounds = array<i64: 2, 1, 128>}, {transform_indices = @transform_2, window_bounds = array<i64: 1, 2, 4>}, {transform_indices = @transform_3, window_bounds = array<i64: 1, 2, 4>}, {transform_indices = @transform_4, window_bounds = array<i64: 1, 2, 4>}]} {
    %c0_i32 = arith.constant 0 : i32
    %0 = arith.cmpi eq, %arg1, %c0_i32 : i32
    %1 = arith.extui %0 : i1 to i32
    %c0_i32_0 = arith.constant 0 : i32
    %2 = arith.cmpi ne, %1, %c0_i32_0 : i32
    scf.if %2 {
      %cst_31 = arith.constant 0.000000e+00 : f32
      %44 = vector.broadcast %cst_31 : f32 to vector<2x4x128xf32>
      %c0_32 = arith.constant 0 : index
      %c0_33 = arith.constant 0 : index
      %c0_34 = arith.constant 0 : index
      %45 = vector.load %arg7[%c0_32, %c0_33, %c0_34] : memref<2x4x128xf32, #tpu.memory_space<vmem>>, vector<2x4x128xf32>
      tpu.vector_store %arg7[%c0_32, %c0_33, %c0_34], %44 {strides = array<i32>} : memref<2x4x128xf32, #tpu.memory_space<vmem>>, vector<2x4x128xf32>,
      %cst_35 = arith.constant 0.000000e+00 : f32
      %46 = vector.broadcast %cst_35 : f32 to vector<2x4x128xf32>
      %c0_36 = arith.constant 0 : index
      %c0_37 = arith.constant 0 : index
      %c0_38 = arith.constant 0 : index
      %47 = vector.load %arg8[%c0_36, %c0_37, %c0_38] : memref<2x4x128xf32, #tpu.memory_space<vmem>>, vector<2x4x128xf32>
      tpu.vector_store %arg8[%c0_36, %c0_37, %c0_38], %46 {strides = array<i32>} : memref<2x4x128xf32, #tpu.memory_space<vmem>>, vector<2x4x128xf32>,
      %cst_39 = arith.constant 0.000000e+00 : f32
      %48 = vector.broadcast %cst_39 : f32 to vector<2x4x128xf32>
      %c0_40 = arith.constant 0 : index
      %c0_41 = arith.constant 0 : index
      %c0_42 = arith.constant 0 : index
      %49 = vector.load %arg9[%c0_40, %c0_41, %c0_42] : memref<2x4x128xf32, #tpu.memory_space<vmem>>, vector<2x4x128xf32>
      tpu.vector_store %arg9[%c0_40, %c0_41, %c0_42], %48 {strides = array<i32>} : memref<2x4x128xf32, #tpu.memory_space<vmem>>, vector<2x4x128xf32>,
    } else {
    }
    %3 = tpu.iota {dimensions = array<i32: 1>} : vector<1x4x128xi32>
    %cst = arith.constant 0.000000e+00 : f32
    %4 = vector.broadcast %cst : f32 to vector<2x4x128xf32>
    %cst_1 = arith.constant 0.000000e+00 : f32
    %5 = vector.broadcast %cst_1 : f32 to vector<2x4x128xf32>
    %cst_2 = arith.constant 0.000000e+00 : f32
    %6 = vector.broadcast %cst_2 : f32 to vector<2x4x128xf32>
    %c0 = arith.constant 0 : index
    %c0_3 = arith.constant 0 : index
    %c0_4 = arith.constant 0 : index
    %7 = vector.load %arg2[%c0, %c0_3, %c0_4] : memref<2x4x128xf32, #tpu.memory_space<vmem>>, vector<2x4x128xf32>
    %c0_5 = arith.constant 0 : index
    %c0_6 = arith.constant 0 : index
    %c0_7 = arith.constant 0 : index
    %8 = vector.load %arg3[%c0_5, %c0_6, %c0_7] : memref<2x1x128xi32, #tpu.memory_space<vmem>>, vector<2x1x128xi32>
    %cst_8 = arith.constant dense<0xFF800000> : vector<2x128xf32>
    %9 = vector.multi_reduction <maximumf>, %7, %cst_8 [1] : vector<2x4x128xf32> to vector<2x128xf32>
    %10 = vector.shape_cast %9 : vector<2x128xf32> to vector<2x1x128xf32>
    %11 = vector.broadcast %10 : vector<2x1x128xf32> to vector<2x4x128xf32>
    %12 = arith.subf %7, %11 : vector<2x4x128xf32>
    %13 = math.exp %12 : vector<2x4x128xf32>
    %cst_9 = arith.constant dense<0.000000e+00> : vector<2x128xf32>
    %14 = vector.multi_reduction <add>, %13, %cst_9 [1] : vector<2x4x128xf32> to vector<2x128xf32>
    %15 = vector.shape_cast %14 : vector<2x128xf32> to vector<2x1x128xf32>
    %16 = tpu.reciprocal %15 {approx = true} : vector<2x1x128xf32> -> vector<2x1x128xf32>
    %17 = arith.mulf %15, %16 : vector<2x1x128xf32>
    %cst_10 = arith.constant 2.000000e+00 : f32
    %18 = vector.broadcast %cst_10 : f32 to vector<2x1x128xf32>
    %19 = arith.subf %18, %17 : vector<2x1x128xf32>
    %20 = arith.mulf %16, %19 : vector<2x1x128xf32>
    %21 = vector.broadcast %20 : vector<2x1x128xf32> to vector<2x4x128xf32>
    %22 = arith.mulf %13, %21 : vector<2x4x128xf32>
    %23 = vector.broadcast %8 : vector<2x1x128xi32> to vector<2x4x128xi32>
    %24 = vector.broadcast %3 : vector<1x4x128xi32> to vector<2x4x128xi32>
    %25 = arith.cmpi eq, %23, %24 : vector<2x4x128xi32>
    %26 = arith.extui %25 : vector<2x4x128xi1> to vector<2x4x128xi32>
    %27 = arith.sitofp %26 : vector<2x4x128xi32> to vector<2x4x128xf32>
    %28 = arith.mulf %22, %27 : vector<2x4x128xf32>
    %29 = arith.addf %4, %28 : vector<2x4x128xf32>
    %30 = arith.addf %5, %22 : vector<2x4x128xf32>
    %31 = arith.addf %6, %27 : vector<2x4x128xf32>
    %c0_11 = arith.constant 0 : index
    %c0_12 = arith.constant 0 : index
    %c0_13 = arith.constant 0 : index
    %32 = vector.load %arg7[%c0_11, %c0_12, %c0_13] : memref<2x4x128xf32, #tpu.memory_space<vmem>>, vector<2x4x128xf32>
    %33 = arith.addf %32, %29 : vector<2x4x128xf32>
    %c0_14 = arith.constant 0 : index
    %c0_15 = arith.constant 0 : index
    %c0_16 = arith.constant 0 : index
    %34 = vector.load %arg7[%c0_14, %c0_15, %c0_16] : memref<2x4x128xf32, #tpu.memory_space<vmem>>, vector<2x4x128xf32>
    tpu.vector_store %arg7[%c0_14, %c0_15, %c0_16], %33 {strides = array<i32>} : memref<2x4x128xf32, #tpu.memory_space<vmem>>, vector<2x4x128xf32>,
    %c0_17 = arith.constant 0 : index
    %c0_18 = arith.constant 0 : index
    %c0_19 = arith.constant 0 : index
    %35 = vector.load %arg8[%c0_17, %c0_18, %c0_19] : memref<2x4x128xf32, #tpu.memory_space<vmem>>, vector<2x4x128xf32>
    %36 = arith.addf %35, %30 : vector<2x4x128xf32>
    %c0_20 = arith.constant 0 : index
    %c0_21 = arith.constant 0 : index
    %c0_22 = arith.constant 0 : index
    %37 = vector.load %arg8[%c0_20, %c0_21, %c0_22] : memref<2x4x128xf32, #tpu.memory_space<vmem>>, vector<2x4x128xf32>
    tpu.vector_store %arg8[%c0_20, %c0_21, %c0_22], %36 {strides = array<i32>} : memref<2x4x128xf32, #tpu.memory_space<vmem>>, vector<2x4x128xf32>,
    %c0_23 = arith.constant 0 : index
    %c0_24 = arith.constant 0 : index
    %c0_25 = arith.constant 0 : index
    %38 = vector.load %arg9[%c0_23, %c0_24, %c0_25] : memref<2x4x128xf32, #tpu.memory_space<vmem>>, vector<2x4x128xf32>
    %39 = arith.addf %38, %31 : vector<2x4x128xf32>
    %c0_26 = arith.constant 0 : index
    %c0_27 = arith.constant 0 : index
    %c0_28 = arith.constant 0 : index
    %40 = vector.load %arg9[%c0_26, %c0_27, %c0_28] : memref<2x4x128xf32, #tpu.memory_space<vmem>>, vector<2x4x128xf32>
    tpu.vector_store %arg9[%c0_26, %c0_27, %c0_28], %39 {strides = array<i32>} : memref<2x4x128xf32, #tpu.memory_space<vmem>>, vector<2x4x128xf32>,
    %c0_i32_29 = arith.constant 0 : i32
    %41 = arith.cmpi eq, %arg1, %c0_i32_29 : i32
    %42 = arith.extui %41 : i1 to i32
    %c0_i32_30 = arith.constant 0 : i32
    %43 = arith.cmpi ne, %42, %c0_i32_30 : i32
    scf.if %43 {
      %c0_31 = arith.constant 0 : index
      %c0_32 = arith.constant 0 : index
      %c0_33 = arith.constant 0 : index
      %44 = vector.load %arg7[%c0_31, %c0_32, %c0_33] : memref<2x4x128xf32, #tpu.memory_space<vmem>>, vector<2x4x128xf32>
      %cst_34 = arith.constant dense<0.000000e+00> : vector<2x4xf32>
      %45 = vector.multi_reduction <add>, %44, %cst_34 [2] : vector<2x4x128xf32> to vector<2x4xf32>
      %46 = vector.shape_cast %45 : vector<2x4xf32> to vector<1x2x4xf32>
      %c0_35 = arith.constant 0 : index
      %c0_36 = arith.constant 0 : index
      %c0_37 = arith.constant 0 : index
      %47 = vector.load %arg4[%c0_35, %c0_36, %c0_37] : memref<1x2x4xf32, #tpu.memory_space<vmem>>, vector<1x2x4xf32>
      tpu.vector_store %arg4[%c0_35, %c0_36, %c0_37], %46 {strides = array<i32>} : memref<1x2x4xf32, #tpu.memory_space<vmem>>, vector<1x2x4xf32>,
      %c0_38 = arith.constant 0 : index
      %c0_39 = arith.constant 0 : index
      %c0_40 = arith.constant 0 : index
      %48 = vector.load %arg8[%c0_38, %c0_39, %c0_40] : memref<2x4x128xf32, #tpu.memory_space<vmem>>, vector<2x4x128xf32>
      %cst_41 = arith.constant dense<0.000000e+00> : vector<2x4xf32>
      %49 = vector.multi_reduction <add>, %48, %cst_41 [2] : vector<2x4x128xf32> to vector<2x4xf32>
      %50 = vector.shape_cast %49 : vector<2x4xf32> to vector<1x2x4xf32>
      %c0_42 = arith.constant 0 : index
      %c0_43 = arith.constant 0 : index
      %c0_44 = arith.constant 0 : index
      %51 = vector.load %arg5[%c0_42, %c0_43, %c0_44] : memref<1x2x4xf32, #tpu.memory_space<vmem>>, vector<1x2x4xf32>
      tpu.vector_store %arg5[%c0_42, %c0_43, %c0_44], %50 {strides = array<i32>} : memref<1x2x4xf32, #tpu.memory_space<vmem>>, vector<1x2x4xf32>,
      %c0_45 = arith.constant 0 : index
      %c0_46 = arith.constant 0 : index
      %c0_47 = arith.constant 0 : index
      %52 = vector.load %arg9[%c0_45, %c0_46, %c0_47] : memref<2x4x128xf32, #tpu.memory_space<vmem>>, vector<2x4x128xf32>
      %cst_48 = arith.constant dense<0.000000e+00> : vector<2x4xf32>
      %53 = vector.multi_reduction <add>, %52, %cst_48 [2] : vector<2x4x128xf32> to vector<2x4xf32>
      %54 = vector.shape_cast %53 : vector<2x4xf32> to vector<1x2x4xf32>
      %c0_49 = arith.constant 0 : index
      %c0_50 = arith.constant 0 : index
      %c0_51 = arith.constant 0 : index
      %55 = vector.load %arg6[%c0_49, %c0_50, %c0_51] : memref<1x2x4xf32, #tpu.memory_space<vmem>>, vector<1x2x4xf32>
      tpu.vector_store %arg6[%c0_49, %c0_50, %c0_51], %54 {strides = array<i32>} : memref<1x2x4xf32, #tpu.memory_space<vmem>>, vector<1x2x4xf32>,
    } else {
    }
    return
  }
  func.func @transform_0(%arg0: i32, %arg1: i32) -> (i32, i32, i32) {
    %c1_i32 = arith.constant 1 : i32
    %0 = arith.muli %arg0, %c1_i32 : i32
    %1 = arith.addi %0, %arg1 : i32
    %c0_i32 = arith.constant 0 : i32
    %c0_i32_0 = arith.constant 0 : i32
    %c0_i32_1 = arith.constant 0 : i32
    return %c0_i32, %c0_i32_0, %1 : i32, i32, i32
  }
  func.func @transform_1(%arg0: i32, %arg1: i32) -> (i32, i32, i32) {
    %c1_i32 = arith.constant 1 : i32
    %0 = arith.muli %arg0, %c1_i32 : i32
    %1 = arith.addi %0, %arg1 : i32
    %c0_i32 = arith.constant 0 : i32
    %c0_i32_0 = arith.constant 0 : i32
    %c0_i32_1 = arith.constant 0 : i32
    return %c0_i32, %c0_i32_0, %1 : i32, i32, i32
  }
  func.func @transform_2(%arg0: i32, %arg1: i32) -> (i32, i32, i32) {
    %c0_i32 = arith.constant 0 : i32
    %c0_i32_0 = arith.constant 0 : i32
    %c0_i32_1 = arith.constant 0 : i32
    return %arg0, %c0_i32, %c0_i32_0 : i32, i32, i32
  }
  func.func @transform_3(%arg0: i32, %arg1: i32) -> (i32, i32, i32) {
    %c0_i32 = arith.constant 0 : i32
    %c0_i32_0 = arith.constant 0 : i32
    %c0_i32_1 = arith.constant 0 : i32
    return %arg0, %c0_i32, %c0_i32_0 : i32, i32, i32
  }
  func.func @transform_4(%arg0: i32, %arg1: i32) -> (i32, i32, i32) {
    %c0_i32 = arith.constant 0 : i32
    %c0_i32_0 = arith.constant 0 : i32
    %c0_i32_1 = arith.constant 0 : i32
    return %arg0, %c0_i32, %c0_i32_0 : i32, i32, i32
  }
}

</mosaic_0001>

<bundles_post_ra>
// kernel: tpu_custom_call.1
= control target key start
LH: loop header
LB: loop body
LE: loop exit
PB: predicated region body
PF: predicated region fallthrough
CT: control target
= control target key end

     0   :  { %s1265_s0 = inlined_call_operand.hbm [shape: f32[2,4,256], index: 0, kind: input, shape index: {}]   ;;  %s1266_s1 = inlined_call_operand.hbm [shape: s32[2,1,256], index: 1, kind: input, shape index: {}]   ;;  %s1267_s2 = inlined_call_operand.hbm [shape: f32[2,2,4], index: 2, kind: output, shape index: {0}]   ;;  %s1268_s3 = inlined_call_operand.hbm [shape: f32[2,2,4], index: 3, kind: output, shape index: {1}]   ;;  %s1269_s4 = inlined_call_operand.hbm [shape: f32[2,2,4], index: 4, kind: output, shape index: {2}]  }
   0x1   :  { %1274 = sst [smem:[#allocation22_spill]] %s1265_s0 }
   0x2   :  { %10 = vsyncpa [#allocation6], 0 }
   0x3   :  { %12 = vsyncpa [#allocation6 + $0x1], 0 }
   0x4   :  { %13 = vsyncpa [#allocation9], 0 }
   0x5   :  { %15 = vsyncpa [#allocation9 + $0x1], 0 }
   0x6   :  { %16 = vsyncpa [#allocation7], 0 }
   0x7   :  { %18 = vsyncpa [#allocation7 + $0x1], 0 }
   0x8   :  { %19 = vsyncpa [#allocation12], 0 }
   0x9   :  { %21 = vsyncpa [#allocation12 + $0x1], 0  ;;  %s1018_s15 = smov 0   ;;  %s1020_s16 = smov 0  }
   0xa   :  { %s1022_s17 = smov 0   ;;  %s1024_s18 = smov 0  }
   0xb   :  { %s1026_s19 = smov 0   ;;  %s1028_s20 = smov 0  }
   0xc LB: > { %1275 = sst [smem:[#allocation18_spill]] %s972_s17  ;;  %s1049_s21 = sadd.s32 4294967295, %s984_s20   ;;  %s984_s20 = sphi %s1028_s20, %s27_s20   ;;  %s980_s19 = sphi %s1026_s19, %s1293_s19   ;;  %s976_s18 = sphi %s1024_s18, %s1292_s18   ;;  %s972_s17 = sphi %s1022_s17, %s1288_s17   ;;  %s968_s16 = sphi %s1020_s16, %s1291_s16   ;;  %s964_s15 = sphi %s1018_s15, %s1290_s15  }
   0xd   : > { %s1270_s22 = sadd.s32 4294967294, %s984_s20   ;;  %s39_s23 = sadd.s32 1, %s980_s19 }
   0xe   : > { %s48_s24 = sadd.s32 1, %s972_s17  ;;  %p41_p0 = scmp.ge.s32.totalorder %s39_s23, 2 }
   0xf   : > { %p55_p1 = scmp.ne.s32.totalorder %s972_s17, %s968_s16  ;;  %p56_p2 = scmp.eq.s32.totalorder %s984_s20, 0 }
  0x10   : > { %p61_p3 = scmp.ne.s32.totalorder %s968_s16, %s964_s15  ;;  %s1295_s23 = smov (%p41_p0, %s39_s23), 0 }
  0x11   : > { %1276 = sst [smem:[#allocation19_spill]] %s1295_s23  ;;  %p1061_p4 = por %p56_p2, %p55_p1 }
  0x12   : > { %p62_p5 = scmp.eq.s32.totalorder %s1049_s21, 0  ;;  %s45_s26 = ssub.s32 %s980_s19, %s1295_s23 }
  0x13   : > { %p113_p6 = scmp.eq.s32.totalorder %s1049_s21, 1  ;;  %p46_p7 = scmp.eq.s32.totalorder %s45_s26, 0 }
  0x14   : > { %p1069_p8 = por %p62_p5, %p61_p3  ;;  %p119_p10 = scmp.eq.s32.totalorder %s1270_s22, 1 }
  0x15   : > { %p1073_p9 = por %p113_p6, %p55_p1  ;;  %p664_p12 = scmp.ge.s32.totalorder %s984_s20, 2 }
  0x16   : > { %s1080_s29 = scalar_select %p46_p7, %s972_s17, %s48_s24  }
  0x17   : > { %p1082_p11 = por %p119_p10, %p61_p3  ;;  %p711_p13 = scmp.lt.s32.totalorder %s984_s20, 2 }
  0x18   : > { %1280 = sst [smem:[#allocation20_spill]] %s1080_s29  ;;  %s1089_s5 = sand.u32 1, %s972_s17  }
  0x19   : > { %s1281_s30 = scalar_select %p1082_p11, 1, 0 }
  0x1a   : > { %s665_s6 = sshll.u32 %s1089_s5, 3  ;;  %s666_s7 = sshll.u32 %s980_s19, 2 }
  0x1b   : > { %1282 = sst [smem:[#allocation21_spill]] %s1281_s30  ;;  %s195_s11 = scalar_lea.vmem [#allocation5], %s665_s6 }
  0x1c   : > { %s1283_s0 = sld [smem:[#allocation22_spill]]  ;;  %s203_s12 = sshll.u32 %s195_s11, 4  ;;  %s204_s12 = int_to_ptr.vmem [resolvable:$true] %s203_s12 }
  0x1d   : > { %p1098_p0 = pnand %p711_p13, %p1061_p4  ;;  %s192_s24 = scalar_lea.sflag [#allocation6], %s1089_s5 }
  0x1e   : > { %s986_s26 = smov 128   ;;  %s987_s22 = smov 64  }
  0x1f   : > { %s988_s23 = smov 4   ;;  %p668_p1 = scmp.ge.s32.totalorder %s984_s20, 1 }
  0x20   : > { %p232_p2 = scmp.lt.s32.totalorder %s984_s20, 3  ;;  %s667_s6 = sshll.u32 %s1089_s5, 1 }
  0x21   : > { %s221_s25 = scalar_lea.hbm %s1266_s1, %s980_s19  ;;  %s217_s9 = scalar_lea.vmem [#allocation8], %s667_s6 }
  0x22   : > { %s200_s10 = scalar_lea.hbm %s1283_s0, %s666_s7  ;;  %p233_p3 = pnand %p668_p1, %p232_p2 }
  0x23   : > { %s201_s13 = sshll.u32 %s200_s10, 4  ;;  %s224_s10 = sshll.u32 %s217_s9, 4  ;;  %s202_s13 = int_to_ptr.hbm [resolvable:$true] %s201_s13  ;;  %s225_s10 = int_to_ptr.vmem [resolvable:$true] %s224_s10 }
  0x24   : > { %697 = dma.hbm_to_vmem [thread:$0]  (!%p1098_p0), %s202_s13, 128, %s204_s12, %s192_s24, %s986_s26, %s987_s22, %s988_s23  }
  0x25   : > { %s222_s11 = sshll.u32 %s221_s25, 4  ;;  %s214_s0 = scalar_lea.sflag [#allocation9], %s1089_s5  ;;  %s223_s11 = int_to_ptr.hbm [resolvable:$true] %s222_s11 }
  0x26   : > { %s989_s29 = smov 32   ;;  %s990_s17 = smov 16  }
  0x27   : > { %s991_s30 = smov 1   ;;  %236 = sbr.rel (%p233_p3) target bundleno = 268 (0x10c), region = 28 }
  0x28   : > { %700 = dma.hbm_to_vmem [thread:$0]  (!%p1098_p0), %s223_s11, 32, %s225_s10, %s214_s0, %s989_s29, %s990_s17, %s991_s30  }
  0x29   : > { %s1116_s22 = sand.u32 (!%p233_p3), 1, %s968_s16  }
  0x2a   : > { %s669_s23 = sshll.u32 (!%p233_p3), %s1116_s22, 3  ;;  %s239_s12 = scalar_lea.sflag (!%p233_p3), [#allocation6], %s1116_s22 }
  0x2b   : > { %s242_s13 = scalar_lea.vmem (!%p233_p3), [#allocation5], %s669_s23 }
  0x2c   : > { %947 = dma.done.wait (%p1069_p8), %s239_s12, 128  }
  0x2d   : > { %949 = vsyncadd (%p1069_p8), %s239_s12, 4294967168  ;;  %s1125_s5 = sshll.u32 %s1116_s22, 1  ;;  %s249_s0 = scalar_lea.sflag [#allocation9], %s1116_s22 }
  0x2e   : > { %s252_s17 = scalar_lea.vmem [#allocation8], %s1125_s5 }
  0x2f   : > { %951 = dma.done.wait (%p1069_p8), %s249_s0, 32  }
  0x30   : > { %953 = vsyncadd (%p1069_p8), %s249_s0, 4294967264  ;;  %v992_v0 = vmov 0.0   ;;  %v305_v1 = vlaneseq  ;;  %vm311_vm0 = vcmask 1043456   ;;  %v768_v3 = vld [vmem:[%s252_s17] ss:$0 sm:$0xff]  ;;  %vm407_vm3 = vcmask 1041409  }
  0x31   : > { %303 = vst [vmem:[#allocation4] sm:$0xf] %v992_v0  ;;  %v307_v4 = vld [vmem:[%s242_s13] sm:$0xf]  ;;  %v308_v8 = vld [vmem:[%s242_s13 + $0x4] sm:$0xf] }
  0x32   : > { %299 = vst [vmem:[#allocation2] sm:$0xf] %v992_v0  ;;  %v306_v2 = vshrl.u32 %v305_v1, 7  ;;  %v312_v6 = vsel %vm311_vm0, %v307_v4, -inf  ;;  %v319_v10 = vsel %vm311_vm0, %v308_v8, -inf  ;;  %vm410_vm4 = vcmask 25600  }
  0x33   : > { %300 = vst [vmem:[#allocation2 + $0x4] sm:$0xf] %v992_v0  ;;  %v313_v7 = vrot.slane %v312_v6, 4  ;;  %v320_v13 = vrot.slane %v319_v10, 4  ;;  %v769_v29 = vld [vmem:[%s252_s17 + $0x1] ss:$0 sm:$0xff] }
  0x34   : > { %301 = vst [vmem:[#allocation3] sm:$0xf] %v992_v0  ;;  %vm358_vm1 = vcmp.eq.s32.totalorder %v768_v3, %v306_v2  ;;  %vm359_vm2 = vcmp.eq.s32.totalorder %v769_v29, %v306_v2  ;;  %s292_s27 = scalar_lea.vmem [#allocation13], %s1125_s5  ;;  %s679_s29 = sshll.u32 %s976_s18, 1 }
  0x35   : > { %302 = vst [vmem:[#allocation3 + $0x4] sm:$0xf] %v992_v0  ;;  %v1137_v9 = vsel %vm358_vm1, 1.0, %v992_v0  ;;  %v314_v12 = vmax.f32 %v312_v6, %v313_v7  ;;  %v321_v15 = vmax.f32 %v319_v10, %v320_v13  ;;  %v675_v30 = vsel %vm359_vm2, 1.0, %v992_v0  ;;  %s447_s30 = sand.u32 1, %s1049_s21   ;;  %s477_s26 = scalar_lea.hbm %s1268_s3, %s679_s29 }
  0x36   : > { %304 = vst [vmem:[#allocation4 + $0x4] sm:$0xf] %v992_v0  ;;  %s285_s6 = scalar_lea.vmem [#allocation11], %s1125_s5  ;;  %s491_s9 = scalar_lea.hbm %s1269_s4, %s679_s29 }
  0x37   : > { %v315_v14 = vrot.slane %v314_v12, 2  ;;  %v322_v17 = vrot.slane %v321_v15, 2  ;;  %s1162_s7 = sshll.u32 %s285_s6, 4  ;;  %s463_s23 = scalar_lea.hbm %s1267_s2, %s679_s29  ;;  %s480_s7 = int_to_ptr.vmem [resolvable:$true] %s1162_s7 }
  0x38   : > { %v384_v5 = vld [vmem:[#allocation4] sm:$0xf]  ;;  %s1171_s18 = sshll.u32 %s477_s26, 4  ;;  %s1173_s21 = sshll.u32 %s292_s27, 4  ;;  %s482_s18 = int_to_ptr.hbm [resolvable:$true] %s1171_s18  ;;  %s494_s21 = int_to_ptr.vmem [resolvable:$true] %s1173_s21 }
  0x39   : > { %v386_v11 = vadd.f32 %v1137_v9, %v384_v5  ;;  %v316_v16 = vmax.f32 %v314_v12, %v315_v14  ;;  %v323_v19 = vmax.f32 %v321_v15, %v322_v17  ;;  %v372_v61 = vld [vmem:[#allocation2] sm:$0xf]  ;;  %v404_v17 = vand.u32 127, %v305_v1  ;;  %s1175_s12 = sshll.u32 %s491_s9, 4  ;;  %s278_s13 = scalar_lea.vmem [#allocation10], %s1125_s5  ;;  %s496_s12 = int_to_ptr.hbm [resolvable:$true] %s1175_s12 }
  0x3a   : > { %v373_v3 = vld [vmem:[#allocation2 + $0x4] sm:$0xf]  ;;  %s1180_s0 = sshll.u32 %s278_s13, 4  ;;  %s1182_s17 = sshll.u32 %s463_s23, 4  ;;  %s466_s0 = int_to_ptr.vmem [resolvable:$true] %s1180_s0  ;;  %s468_s17 = int_to_ptr.hbm [resolvable:$true] %s1182_s17 }
  0x3b   : > { %388 = vst [vmem:[#allocation4] sm:$0xf] %v386_v11  ;;  %v317_v18 = vrot.slane %v316_v16, 1  ;;  %v324_v21 = vrot.slane %v323_v19, 1  ;;  %v378_v58 = vld [vmem:[#allocation3] sm:$0xf] }
  0x3c   : > { %v379_v62 = vld [vmem:[#allocation3 + $0x4] sm:$0xf]  ;;  %s852_s29 = sshra.s32 %s482_s18, 4  ;;  %s858_s8 = scalar_lea.hbm %s1268_s3, 4  ;;  %s853_s29 = int_to_ptr.hbm [resolvable:$true] %s852_s29 }
  0x3d   : > { %v318_v20 = vmax.f32 %v316_v16, %v317_v18  ;;  %v325_v25 = vmax.f32 %v323_v19, %v324_v21  ;;  %v385_v31 = vld [vmem:[#allocation4 + $0x4] sm:$0xf]  ;;  %s854_s14 = scalar_lea.hbm %s853_s29, 2  ;;  %p859_p7 = scmp.lt.s32.totalorder %s853_s29, %s1268_s3 }
  0x3e   : > { %v387_v32 = vadd.f32 %v675_v30, %v385_v31  ;;  %p855_p4 = scmp.ne.s32.totalorder %s853_s29, %s854_s14  ;;  %p860_p8 = scmp.lt.s32.totalorder %s858_s8, %s854_s14 }
  0x3f   : > { %v326_v24 = vsub.f32 %v307_v4, %v318_v20  ;;  %v327_v27 = vsub.f32 %v308_v8, %v325_v25 }
  0x40   : > { %389 = vst [vmem:[#allocation4 + $0x4] sm:$0xf] %v387_v32  ;;  %p856_p5 = pnand %p855_p4, %p1073_p9  ;;  %p861_p10 = por %p860_p8, %p859_p7 }
  0x41   : > { %v328_v26 = vmul.f32 1.442695, %v326_v24  ;;  %v330_v28 = vmul.f32 1.442695, %v327_v27 }
  0x42   : > { %v427_v22 = vld [vmem:[#allocation4] sm:$0xf]  ;;  %p857_p6 = pneg %p856_p5 }
  0x43   : > { %v429_v23 = vsel %vm311_vm0, %v427_v22, 0.0  ;;  %770 = vpow2.f32 %v328_v26 }
  0x44   : > { %430 = vadd.xlane.f32.xlu2 %v429_v23  ;;  %772 = vpow2.f32 %v330_v28  ;;  %p862_p13 = pnand %p861_p10, %p857_p6 }
  0x47   : > { %v428_v43 = vld [vmem:[#allocation4 + $0x4] sm:$0xf] }
  0x48   : > { %v432_v45 = vsel %vm311_vm0, %v428_v43, 0.0 }
  0x49   : > { %v771_v33 = vpop.eup %770 }
  0x4a   : > { %v332_v34 = vsel %vm311_vm0, %v771_v33, 0.0  ;;  %v773_v35 = vpop.eup %772 }
  0x4b   : > { %v333_v36 = vrot.slane %v332_v34, 4  ;;  %v339_v37 = vsel %vm311_vm0, %v773_v35, 0.0 }
  0x4c   : > { %v340_v39 = vrot.slane %v339_v37, 4  ;;  %433 = vadd.xlane.f32.xlu2 %v432_v45 }
  0x4d   : > { %v334_v38 = vadd.f32 %v333_v36, %v332_v34 }
  0x4e   : > { %v341_v41 = vadd.f32 %v340_v39, %v339_v37 }
  0x4f   : > { %v335_v40 = vrot.slane %v334_v38, 2 }
  0x50   : > { %v342_v44 = vrot.slane %v341_v41, 2 }
  0x51   : > { %v336_v42 = vadd.f32 %v335_v40, %v334_v38 }
  0x52   : > { %v343_v47 = vadd.f32 %v342_v44, %v341_v41 }
  0x53   : > { %v337_v46 = vrot.slane %v336_v42, 1 }
  0x54   : > { %v344_v49 = vrot.slane %v343_v47, 1 }
  0x55   : > { %v338_v48 = vadd.f32 %v337_v46, %v336_v42 }
  0x56   : > { %v345_v50 = vadd.f32 %v344_v49, %v343_v47 }
  0x57   : > { %774 = vrcp.f32 %v338_v48 }
  0x58   : > { %776 = vrcp.f32 %v345_v50 }
  0x5d   : > { %v775_v51 = vpop.eup %774 }
  0x5e   : > { %v348_v52 = vmul.f32 %v775_v51, %v338_v48  ;;  %v777_v53 = vpop.eup %776 }
  0x5f   : > { %v349_v55 = vmul.f32 %v777_v53, %v345_v50 }
  0x60   : > { %v350_v54 = vsub.f32 2.0, %v348_v52 }
  0x61   : > { %v351_v57 = vsub.f32 2.0, %v349_v55 }
  0x62   : > { %v352_v56 = vmul.f32 %v775_v51, %v350_v54 }
  0x63   : > { %v353_v60 = vmul.f32 %v777_v53, %v351_v57 }
  0x64   : > { %v354_v59 = vmul.f32 %v771_v33, %v352_v56 }
  0x65   : > { %v355_v2 = vmul.f32 %v773_v35, %v353_v60 }
  0x66   : > { %v380_v63 = vadd.f32 %v378_v58, %v354_v59  ;;  %v364_v0 = vmul.f32 %v1137_v9, %v354_v59 }
  0x67   : > { %v381_v5 = vadd.f32 %v379_v62, %v355_v2  ;;  %v365_v6 = vmul.f32 %v675_v30, %v355_v2 }
  0x68   : > { %382 = vst [vmem:[#allocation3] sm:$0xf] %v380_v63  ;;  %v374_v4 = vadd.f32 %v372_v61, %v364_v0 }
  0x69   : > { %v375_v7 = vadd.f32 %v373_v3, %v365_v6  ;;  %383 = vst [vmem:[#allocation3 + $0x4] sm:$0xf] %v381_v5 }
  0x6a   : > { %376 = vst [vmem:[#allocation2] sm:$0xf] %v374_v4 }
  0x6b   : > { %377 = vst [vmem:[#allocation2 + $0x4] sm:$0xf] %v375_v7 }
  0x6f   : > { %v412_v8 = vld [vmem:[#allocation3] sm:$0xf] }
  0x70   : > { %v414_v10 = vsel %vm311_vm0, %v412_v8, 0.0  ;;  %v413_v9 = vld [vmem:[#allocation3 + $0x4] sm:$0xf] }
  0x71   : > { %415 = vadd.xlane.f32.xlu0 %v414_v10  ;;  %v393_v11 = vld [vmem:[#allocation2] sm:$0xf]  ;;  %v417_v14 = vsel %vm311_vm0, %v413_v9, 0.0 }
  0x72   : > { %v395_v12 = vsel %vm311_vm0, %v393_v11, 0.0  ;;  %v394_v13 = vld [vmem:[#allocation2 + $0x4] sm:$0xf] }
  0x73   : > { %396 = vadd.xlane.f32.xlu1 %v395_v12  ;;  %v398_v15 = vsel %vm311_vm0, %v394_v13, 0.0 }
  0x79   : > { %418 = vadd.xlane.f32.xlu0 %v417_v14 }
  0x7b   : > { %399 = vadd.xlane.f32.xlu1 %v398_v15 }
  0xb7   : > { %v431_v16 = vpop.xlane.xlu2 %430 }
  0xb8   : > { %v437_v18 = vperm.slane %v431_v16, %v404_v17 }
  0xbf   : > { %v434_v19 = vpop.xlane.xlu2 %433 }
  0xc0   : > { %v438_v20 = vperm.slane %v434_v19, %v404_v17 }
  0xc2   : > { %v439_v21 = vsel %vm407_vm3, %v438_v20, %v437_v18 }
  0xc3   : > { %441 = vst.msk [vmem:[%s292_s27] sm:$0x3] %vm410_vm4, %v439_v21  ;;  %s448_s27 = scalar_lea.sflag [#allocation12], %s447_s30 }
  0xe4   : > { %v416_v22 = vpop.xlane.xlu0 %415 }
  0xe5   : > { %v422_v24 = vperm.slane %v416_v22, %v404_v17 }
  0xe6   : > { %v397_v23 = vpop.xlane.xlu1 %396 }
  0xe7   : > { %v405_v27 = vperm.slane %v397_v23, %v404_v17 }
  0xec   : > { %v419_v1 = vpop.xlane.xlu0 %418 }
  0xed   : > { %v423_v25 = vperm.slane %v419_v1, %v404_v17 }
  0xee   : > { %v400_v26 = vpop.xlane.xlu1 %399 }
  0xef   : > { %v424_v28 = vsel %vm407_vm3, %v423_v25, %v422_v24  ;;  %v406_v29 = vperm.slane %v400_v26, %v404_v17 }
  0xf0   : > { %426 = vst.msk [vmem:[%s285_s6] sm:$0x3] %vm410_vm4, %v424_v28 }
  0xf1   : > { %v408_v30 = vsel %vm407_vm3, %v406_v29, %v405_v27 }
  0xf2   : > { %865 = shalt.err (!%p862_p13)
}
  0xf3   : > { %689 = dma.vmem_to_hbm [thread:$0]  (%p1073_p9), %s480_s7, 32, %s482_s18, %s448_s27   ;;  %411 = vst.msk [vmem:[%s278_s13] sm:$0x3] %vm410_vm4, %v408_v30 }
  0xf4   : > { %s880_s30 = sshra.s32 %s496_s12, 4  ;;  %s886_s23 = scalar_lea.hbm %s1269_s4, 4  ;;  %s881_s30 = int_to_ptr.hbm [resolvable:$true] %s880_s30 }
  0xf5   : > { %s882_s6 = scalar_lea.hbm %s881_s30, 2  ;;  %p887_p3 = scmp.lt.s32.totalorder %s881_s30, %s1269_s4 }
  0xf6   : > { %p883_p0 = scmp.ne.s32.totalorder %s881_s30, %s882_s6  ;;  %p888_p4 = scmp.lt.s32.totalorder %s886_s23, %s882_s6 }
  0xf8   : > { %p884_p1 = pnand %p883_p0, %p1073_p9  ;;  %p889_p5 = por %p888_p4, %p887_p3 }
  0xfa   : > { %p885_p2 = pneg %p884_p1 }
  0xfc   : > { %p890_p6 = pnand %p889_p5, %p885_p2 }
  0xfe   : > { %893 = shalt.err (!%p890_p6)
}
  0xff   : > { %690 = dma.vmem_to_hbm [thread:$0]  (%p1073_p9), %s494_s21, 32, %s496_s12, %s448_s27  }
 0x100   : > { %s443_s5 = scalar_lea.sflag [#allocation7], %s1116_s22  ;;  %s908_s7 = sshra.s32 %s468_s17, 4  ;;  %s909_s7 = int_to_ptr.hbm [resolvable:$true] %s908_s7 }
 0x101   : > { %s910_s18 = scalar_lea.hbm %s909_s7, 2  ;;  %s914_s26 = scalar_lea.hbm %s1267_s2, 4 }
 0x102   : > { %p911_p7 = scmp.ne.s32.totalorder %s909_s7, %s910_s18  ;;  %p915_p13 = scmp.lt.s32.totalorder %s909_s7, %s1267_s2 }
 0x103   : > { %p916_p0 = scmp.lt.s32.totalorder %s914_s26, %s910_s18 }
 0x104   : > { %p912_p8 = pnand %p911_p7, %p1073_p9 }
 0x105   : > { %p917_p1 = por %p916_p0, %p915_p13 }
 0x106   : > { %p913_p10 = pneg %p912_p8 }
 0x108   : > { %p918_p2 = pnand %p917_p1, %p913_p10 }
 0x10a   : > { %921 = shalt.err (!%p918_p2)
}
 0x10b   : > { %688 = dma.vmem_to_hbm [thread:$0]  (%p1073_p9), %s466_s0, 32, %s468_s17, %s443_s5  }
 0x10c PF: > { %s507_s21 = sand.u32 1, %s964_s15   ;;  %p702_p3 = pnand %p664_p12, %p1082_p11 }
 0x10d   : > { %s508_s12 = scalar_lea.sflag [#allocation7], %s507_s21 }
 0x10e   : > { %p703_p4 = pneg %p702_p3 }
 0x110   : > { %955 = dma.done.wait (%p703_p4), %s508_s12, 32  }
 0x111   : > { %957 = vsyncadd (%p703_p4), %s508_s12, 4294967264  ;;  %s1286_s27 = sadd.s32 4294967294, %s984_s20  }
 0x112   : > { %s517_s28 = sand.u32 1, %s1286_s27  }
 0x113   : > { %s518_s9 = scalar_lea.sflag [#allocation12], %s517_s28 }
 0x114   : > { %959 = dma.done.wait (%p703_p4), %s518_s9, 64  }
 0x115   : > { %961 = vsyncadd (%p703_p4), %s518_s9, 4294967232  ;;  %s27_s20 = sadd.s32 1, %s984_s20   ;;  %s1287_s0 = sld [smem:[#allocation18_spill]] }
 0x116   : > { %p24_p9 = scmp.ge.s32.totalorder %s27_s20, 4   ;;  %s1288_s17 = sld [smem:[#allocation20_spill]] }
 0x117   : > { %s1289_s30 = sld [smem:[#allocation19_spill]]  ;;  %s1290_s15 = smov %s968_s16 }
 0x118   : > { %s1292_s18 = smov %s980_s19 }
 0x119   :  { %26 = sbr.rel (!%p24_p9) target bundleno = 12 (0xc), region = 126 }
 0x11b   : > { %s1291_s16 = smov %s1287_s0 }
 0x11d   : > { %s1293_s19 = smov %s1289_s30 }
 0x11e   :  { %534 = vsyncpa [#allocation6], 1 }
 0x11f   :  { %536 = vsyncpa [#allocation6 + $0x1], 1 }
 0x120   :  { %537 = vsyncpa [#allocation9], 1 }
 0x121   :  { %539 = vsyncpa [#allocation9 + $0x1], 1 }
 0x122   :  { %540 = vsyncpa [#allocation7], 1 }
 0x123   :  { %542 = vsyncpa [#allocation7 + $0x1], 1 }
 0x124   :  { %543 = vsyncpa [#allocation12], 1 }
 0x125   :  { %545 = vsyncpa [#allocation12 + $0x1], 1 }

</bundles_post_ra>
